<compile_context>
chip_gen: v7x
topology: tpu7x:2x2x1
jax: 0.10.0
libtpu: 0.0.40
codegen_flags: <defaults>
</compile_context>

<pallas_src>
import math

import jax
import jax.numpy as jnp
from jax.experimental import pallas as pl
from jax.experimental.pallas import tpu as pltpu


def usernode_kernel(x_ref, w_ref, b_ref, out_ref):
    """One fused matmul: (tm, K) @ (K, H_pad) + bias, single lane-dense store."""
    acc = jnp.dot(x_ref[...], w_ref[...], preferred_element_type=jnp.float32)
    out_ref[...] = (acc + b_ref[...]).astype(out_ref.dtype)


def _round_up(a, m):
    return ((a + m - 1) // m) * m


def usernode_forward(profile, description, wp, bp, wd, bd,
                     *, compute_dtype=jnp.float32, tm_max=512):
    """profile: (N, P), description: (N, E), wp: (P, H/2), wd: (E, H/2),
    bp/bd: (1, H/2). Returns (N, H) float32 = concat(profile@wp+bp, desc@wd+bd)."""
    n, p = profile.shape
    _, e = description.shape
    half = wp.shape[1]
    hidden = 2 * half
    k = p + e

    # ---- wrapper-side prep: fused inputs / block-diagonal weight -------------
    x = jnp.concatenate([profile, description], axis=-1)          # (n, k)

    h_pad = _round_up(hidden, 128)                                 # lane-dense output width
    w = jnp.zeros((k, h_pad), dtype=jnp.float32)
    w = w.at[:p, :half].set(wp)
    w = w.at[p:, half:hidden].set(wd)
    b = jnp.zeros((1, h_pad), dtype=jnp.float32)
    b = b.at[:, :half].set(bp)
    b = b.at[:, half:hidden].set(bd)

    # bf16 operands (f32 accumulation in-kernel) halve HBM/VMEM traffic on v6e/v7x.
    x = x.astype(compute_dtype)
    w = w.astype(compute_dtype)

    # ---- batch tiling --------------------------------------------------------
    row_align = 16 if compute_dtype == jnp.bfloat16 else 8
    tm = _round_up(n, row_align) if n <= tm_max else tm_max
    n_pad = _round_up(n, tm)
    if n_pad != n:
        x = jnp.pad(x, ((0, n_pad - n), (0, 0)))
    grid = (n_pad // tm,)

    out = pl.pallas_call(
        usernode_kernel,
        out_shape=jax.ShapeDtypeStruct((n_pad, h_pad), jnp.float32),
        grid=grid,
        in_specs=[
            pl.BlockSpec((tm, k), lambda i: (i, 0)),       # activations: tiled over batch
            pl.BlockSpec((k, h_pad), lambda i: (0, 0)),    # fused weight: VMEM-resident
            pl.BlockSpec((1, h_pad), lambda i: (0, 0)),    # fused bias:   VMEM-resident
        ],
        out_specs=pl.BlockSpec((tm, h_pad), lambda i: (i, 0)),
        compiler_params=pltpu.CompilerParams(
            dimension_semantics=("parallel",),             # shard batch tiles across TCs
            vmem_limit_bytes=32 * 1024 * 1024),            # explicit budget (v7x-safe)
    )(x, w, b)

    # strip batch padding + output-lane padding
    return out[:n, :hidden]


def init_linear(key, in_features, out_features):
    """Deterministic init mimicking torch.nn.Linear default (uniform +/- 1/sqrt(fan_in)).
    Returns W as (in_features, out_features) (pre-transposed) and b as (1, out_features)."""
    k_w, k_b = jax.random.split(key)
    bound = 1.0 / math.sqrt(in_features)
    w = jax.random.uniform(k_w, (in_features, out_features),
                           minval=-bound, maxval=bound, dtype=jnp.float32)
    b = jax.random.uniform(k_b, (1, out_features),
                           minval=-bound, maxval=bound, dtype=jnp.float32)
    return w, b


if __name__ == "__main__":
    # Small shapes consistent with the module.
    batch = 8
    user_profile_dim = 16
    embedding_dim = 32
    hidden_dim = 64

    key = jax.random.PRNGKey(0)
    k_prof, k_desc, k_p, k_d = jax.random.split(key, 4)

    profile = jax.random.normal(k_prof, (batch, user_profile_dim), dtype=jnp.float32)
    description = jax.random.normal(k_desc, (batch, embedding_dim), dtype=jnp.float32)

    wp, bp = init_linear(k_p, user_profile_dim, hidden_dim // 2)   # property_fc
    wd, bd = init_linear(k_d, embedding_dim, hidden_dim // 2)      # description_fc

    # f32 path: matches the PyTorch module's forward semantics.
    out = usernode_forward(profile, description, wp, bp, wd, bd)
    out = jax.block_until_ready(out)

    ref = jnp.concatenate([profile @ wp + bp, description @ wd + bd], axis=-1)
    assert out.shape == (batch, hidden_dim)
    assert jnp.allclose(out, ref, atol=1e-5, rtol=1e-5)

    # bf16-operand path (v6e/v7x MXU-native, f32 accumulation); compare against
    # a reference computed from the same bf16-cast operands.
    out_bf16 = usernode_forward(profile, description, wp, bp, wd, bd,
                                compute_dtype=jnp.bfloat16)
    out_bf16 = jax.block_until_ready(out_bf16)
    prof_b = profile.astype(jnp.bfloat16).astype(jnp.float32)
    desc_b = description.astype(jnp.bfloat16).astype(jnp.float32)
    wp_b = wp.astype(jnp.bfloat16).astype(jnp.float32)
    wd_b = wd.astype(jnp.bfloat16).astype(jnp.float32)
    ref_b = jnp.concatenate([prof_b @ wp_b + bp, desc_b @ wd_b + bd], axis=-1)
    assert out_bf16.shape == (batch, hidden_dim)
    assert jnp.allclose(out_bf16, ref_b, atol=1e-3, rtol=1e-3)

    # NOTE: at batch=8 this kernel is dominated by fixed launch/grid overhead;
    # the tiling (tm up to 512, weights resident, parallel batch axis) is what
    # pays off at production batch sizes.
    print("KERNEL_OK")
</pallas_src>

<mosaic_0001>
module attributes {stable_mosaic.version = 11 : i64} {
  func.func @usernode_kernel(%arg0: i32, %arg1: memref<8x48xf32, #tpu.memory_space<vmem>>, %arg2: memref<48x128xf32, #tpu.memory_space<vmem>>, %arg3: memref<1x128xf32, #tpu.memory_space<vmem>>, %arg4: memref<8x128xf32, #tpu.memory_space<vmem>>) attributes {dimension_semantics = [#tpu.dimension_semantics<parallel>], iteration_bounds = array<i64: 1>, scalar_prefetch = 0 : i64, scratch_operands = 0 : i64, tpu.core_type = #tpu.core_type<tc>, window_params = [{transform_indices = @transform_0, window_bounds = array<i64: 8, 48>}, {pipeline_mode = #tpu.pipeline_mode<synchronous>, transform_indices = @transform_1, window_bounds = array<i64: 48, 128>}, {pipeline_mode = #tpu.pipeline_mode<synchronous>, transform_indices = @transform_2, window_bounds = array<i64: 1, 128>}, {transform_indices = @transform_3, window_bounds = array<i64: 8, 128>}]} {
    %c0 = arith.constant 0 : index
    %c0_0 = arith.constant 0 : index
    %0 = vector.load %arg1[%c0, %c0_0] : memref<8x48xf32, #tpu.memory_space<vmem>>, vector<8x48xf32>
    %c0_1 = arith.constant 0 : index
    %c0_2 = arith.constant 0 : index
    %1 = vector.load %arg2[%c0_1, %c0_2] : memref<48x128xf32, #tpu.memory_space<vmem>>, vector<48x128xf32>
    %cst = arith.constant dense<0.000000e+00> : vector<8x128xf32>
    %2 = tpu.matmul %0, %1, %cst {dimension_numbers = #tpu.dot_dimension_numbers<[1], [0], [0], [1], [0, 0, 1, 1], [], []>} : vector<8x48xf32>, vector<48x128xf32>, vector<8x128xf32> -> vector<8x128xf32>
    %c0_3 = arith.constant 0 : index
    %c0_4 = arith.constant 0 : index
    %3 = vector.load %arg3[%c0_3, %c0_4] : memref<1x128xf32, #tpu.memory_space<vmem>>, vector<1x128xf32>
    %4 = vector.broadcast %3 : vector<1x128xf32> to vector<8x128xf32>
    %5 = arith.addf %2, %4 : vector<8x128xf32>
    %c0_5 = arith.constant 0 : index
    %c0_6 = arith.constant 0 : index
    %6 = vector.load %arg4[%c0_5, %c0_6] : memref<8x128xf32, #tpu.memory_space<vmem>>, vector<8x128xf32>
    tpu.vector_store %arg4[%c0_5, %c0_6], %5 {strides = array<i32>} : memref<8x128xf32, #tpu.memory_space<vmem>>, vector<8x128xf32>,
    return
  }
  func.func @transform_0(%arg0: i32) -> (i32, i32) {
    %c0_i32 = arith.constant 0 : i32
    %c0_i32_0 = arith.constant 0 : i32
    return %arg0, %c0_i32 : i32, i32
  }
  func.func @transform_1(%arg0: i32) -> (i32, i32) {
    %c0_i32 = arith.constant 0 : i32
    %c0_i32_0 = arith.constant 0 : i32
    %c0_i32_1 = arith.constant 0 : i32
    return %c0_i32, %c0_i32_0 : i32, i32
  }
  func.func @transform_2(%arg0: i32) -> (i32, i32) {
    %c0_i32 = arith.constant 0 : i32
    %c0_i32_0 = arith.constant 0 : i32
    %c0_i32_1 = arith.constant 0 : i32
    return %c0_i32, %c0_i32_0 : i32, i32
  }
  func.func @transform_3(%arg0: i32) -> (i32, i32) {
    %c0_i32 = arith.constant 0 : i32
    %c0_i32_0 = arith.constant 0 : i32
    return %arg0, %c0_i32 : i32, i32
  }
}

</mosaic_0001>

<bundles_post_ra>
// kernel: tpu_custom_call.1
= control target key start
LH: loop header
LB: loop body
LE: loop exit
PB: predicated region body
PF: predicated region fallthrough
CT: control target
= control target key end

     0   :  { %8 = vsyncpa [#allocation3], 0  ;;  %s333_s0 = inlined_call_operand.hbm [shape: f32[8,48], index: 0, kind: input, shape index: {}]   ;;  %s334_s1 = inlined_call_operand.hbm [shape: f32[48,128], index: 1, kind: input, shape index: {}]   ;;  %s335_s2 = inlined_call_operand.vmem [shape: f32[1,128], index: 2, kind: input, shape index: {}]   ;;  %s336_s3 = inlined_call_operand.hbm [shape: f32[8,128], index: 3, kind: output, shape index: {}]  }
   0x1   :  { %9 = vsyncpa [#allocation6], 0 }
   0x2   :  { %10 = vsyncpa [#allocation4], 0  ;;  %s259_s12 = smov [#allocation2]   ;;  %s260_s14 = smov [#allocation5]  }
   0x3   :  { %s17_s13 = sshll.u32 %s259_s12, 4  ;;  %s26_s15 = sshll.u32 %s260_s14, 4  ;;  %s18_s13 = int_to_ptr.vmem [resolvable:$true] %s17_s13  ;;  %s287_s15 = int_to_ptr.vmem [resolvable:$true] %s26_s15 }
   0x4   :  { %s187_s18 = scalar_lea.hbm %s333_s0, 128 }
   0x5   :  { %p188_p0 = scmp.ne.s32.totalorder %s333_s0, %s187_s18  ;;  %p191_p1 = scmp.lt.u32.totalorder %s187_s18, %s333_s0 }
   0x7   :  { %p193_p2 = pnand %p191_p1, %p188_p0 }
   0x9   :  { %196 = shalt.err (!%p193_p2)
}
   0xa   :  { %s197_s23 = scalar_lea.vmem %s18_s13, 128  ;;  %p202_p4 = scmp.lt.s32.totalorder %s18_s13, %s18_s13 }
   0xb   :  { %p198_p3 = scmp.ne.s32.totalorder %s18_s13, %s197_s23  ;;  %p203_p5 = scmp.lt.s32.totalorder %s197_s23, %s197_s23 }
   0xd   :  { %p204_p6 = por %p203_p5, %p202_p4 }
   0xf   :  { %p205_p7 = pnand %p204_p6, %p198_p3 }
  0x11   :  { %208 = shalt.err (!%p205_p7)
}
  0x12   :  { %20 = dma.hbm_to_vmem [thread:$0]  %s333_s0, 128, %s18_s13, [#allocation3]  }
  0x13   :  { %s209_s28 = scalar_lea.hbm %s334_s1, 768 }
  0x14   :  { %p210_p8 = scmp.ne.s32.totalorder %s334_s1, %s209_s28  ;;  %p213_p9 = scmp.lt.u32.totalorder %s209_s28, %s334_s1 }
  0x16   :  { %p215_p10 = pnand %p213_p9, %p210_p8 }
  0x18   :  { %218 = shalt.err (!%p215_p10)
}
  0x19   :  { %s219_s6 = scalar_lea.vmem %s287_s15, 768  ;;  %p224_p12 = scmp.lt.s32.totalorder %s287_s15, %s287_s15 }
  0x1a   :  { %p220_p11 = scmp.ne.s32.totalorder %s287_s15, %s219_s6  ;;  %p225_p13 = scmp.lt.s32.totalorder %s219_s6, %s219_s6 }
  0x1c   :  { %p226_p0 = por %p225_p13, %p224_p12 }
  0x1e   :  { %p227_p1 = pnand %p226_p0, %p220_p11 }
  0x20   :  { %230 = shalt.err (!%p227_p1)
}
  0x21   :  { %s261_s0 = smov 128   ;;  %s262_s7 = smov 8  }
  0x22   :  { %32 = dma.hbm_to_vmem [thread:$0]  %s334_s1, 768, %s287_s15, [#allocation6], %s261_s0, %s261_s0, %s262_s7  }
  0x23   :  { %253 = dma.done.wait [#allocation3], 128  }
  0x24   :  { %254 = vsyncadd [#allocation3], 4294967168 }
  0x25   :  { %255 = dma.done.wait [#allocation6], 768  }
  0x26   :  { %256 = vsyncadd [#allocation6], 4294966528  ;;  %v263_v0 = vmov 0.0|0.0   ;;  %vm264_vm0 = vmmov 0   ;;  %v265_v1 = vmov 0.0   ;;  %v42_v2 = vld [vmem:[#allocation5] sm:$0xff] }
  0x27   :  { %170 = vmatprep.subr.bf16.mxu0 %v263_v0  ;;  %167 = vmatprep.mubr.msk.f32.mxu0 %vm264_vm0, %v265_v1  ;;  %v43_v3 = vld [vmem:[#allocation5 + $0x8] sm:$0xff]  ;;  %v44_v4 = vld [vmem:[#allocation5 + $0x10] sm:$0xff]  ;;  %v45_v6 = vld [vmem:[#allocation5 + $0x18] sm:$0xff]  ;;  %vm55_vm1 = vcmask 392192   ;;  %s266_s11 = smov [#allocation7]  }
  0x28   :  { %v171_v5 = vpack.c.bf16 %v43_v3, %v42_v2  ;;  %v174_v7 = vpack.c.bf16 %v45_v6, %v44_v4  ;;  %v46_v8 = vld [vmem:[#allocation5 + $0x20] sm:$0xff]  ;;  %v47_v9 = vld [vmem:[#allocation5 + $0x28] sm:$0xff]  ;;  %v41_v11 = vld [vmem:[#allocation2] sm:$0xff]  ;;  %s136_s12 = sshll.u32 %s266_s11, 4  ;;  %s137_s12 = int_to_ptr.vmem [resolvable:$true] %s136_s12 }
  0x29   :  { %v177_v10 = vpack.c.bf16 %v47_v9, %v46_v8  ;;  %v146_v12 = vld [vmem:[%s335_s2] ss:$0 sm:$0xff]  ;;  %s231_s13 = scalar_lea.vmem %s137_s12, 128  ;;  %p236_p3 = scmp.lt.s32.totalorder %s137_s12, %s137_s12 }
  0x2a   :  { %172 = vmatpush3.bf16.msra.mxu0 %v171_v5  ;;  %p232_p2 = scmp.ne.s32.totalorder %s137_s12, %s231_s13  ;;  %p237_p4 = scmp.lt.s32.totalorder %s231_s13, %s231_s13 }
  0x2b   :  { %173 = vmatprep.subr.bf16.mxu0 %v263_v0 }
  0x2c   :  { %p238_p5 = por %p237_p4, %p236_p3 }
  0x2e   :  { %175 = vmatpush3.bf16.msra.mxu0 %v174_v7  ;;  %p239_p6 = pnand %p238_p5, %p232_p2 }
  0x2f   :  { %176 = vmatprep.subr.bf16.mxu0 %v263_v0 }
  0x32   :  { %178 = vmatpush3.bf16.msra.mxu0 %v177_v10 }
  0x35   :  { %168 = vmatmul.mubr.msk.f32.vlgmr.msra.gmra.mrb[0].mxu0 %vm55_vm1, %v41_v11 }
 0x108   :  { %v125_v13 = vpop.f32.mrb[0].mxu0 }
 0x109   :  { %v126_v14 = vadd.f32 %v146_v12, %v125_v13  ;;  %v169_v15 = vpop.f32.mrb[1].mxu0 }
 0x10b   :  { %129 = vst [vmem:[#allocation7] sm:$0xff] %v126_v14 }
 0x10c   :  { %242 = shalt.err (!%p239_p6)
}
 0x10d   :  { %s243_s16 = scalar_lea.hbm %s336_s3, 128 }
 0x10e   :  { %p244_p7 = scmp.ne.s32.totalorder %s336_s3, %s243_s16  ;;  %p247_p8 = scmp.lt.u32.totalorder %s243_s16, %s336_s3 }
 0x110   :  { %p249_p9 = pnand %p247_p8, %p244_p7 }
 0x112   :  { %252 = shalt.err (!%p249_p9)
}
 0x113   :  { %139 = dma.vmem_to_hbm [thread:$0]  %s137_s12, 128, %s336_s3, [#allocation4]  }
 0x114   :  { %257 = dma.done.wait [#allocation4], 128  }
 0x115   :  { %258 = vsyncadd [#allocation4], 4294967168 }
 0x116   :  { %143 = vsyncpa [#allocation3], 1 }
 0x117   :  { %144 = vsyncpa [#allocation6], 1 }
 0x118   :  { %145 = vsyncpa [#allocation4], 1 }

</bundles_post_ra>
